<compile_context>
chip_gen: v7x
topology: tpu7x:2x2x1
jax: 0.10.0
libtpu: 0.0.40
codegen_flags: <defaults>
</compile_context>

<pallas_src>
import functools

import jax
import jax.numpy as jnp
from jax.experimental import pallas as pl
from jax.experimental.pallas import tpu as pltpu

# Camembert-style special token ids (synthetic vocabulary).
CLS_IDX = 5   # <s>
SEP_IDX = 6   # </s>
PAD_IDX = 1   # <pad>
UNK_IDX = 3   # <unk>

LN_EPS = 1e-5


# ----------------------------------------------------------------------------
# helpers
# ----------------------------------------------------------------------------
def _layernorm(x, gamma, beta, eps=LN_EPS):
    mean = jnp.mean(x, axis=-1, keepdims=True)
    var = jnp.mean((x - mean) ** 2, axis=-1, keepdims=True)
    return (x - mean) * jax.lax.rsqrt(var + eps) * gamma + beta


@functools.lru_cache(maxsize=None)
def _device_tiling():
    """(vmem_limit_bytes, max_seq_tile) tuned per TPU generation (review)."""
    try:
        vmem_phys = pltpu.get_tpu_info().vmem_capacity_bytes
    except Exception:                      # unknown backend -> known-good v2 defaults
        return 48 * 1024 * 1024, 256
    limit = int(vmem_phys * 0.8)           # explicit scoped budget with headroom
    if vmem_phys <= 64 * 1024 * 1024:      # v7x: 64 MiB physical VMEM per TC
        return limit, 128
    return limit, 512                      # v5e / v6e: 128 MiB physical VMEM


def _seq_tile(S, max_tile):
    """Largest sequence tile <= max_tile dividing S; prefer 128-multiples."""
    if S <= max_tile:
        return S
    for t in range(max_tile - max_tile % 128, 127, -128):   # lane-dense tiles
        if t and S % t == 0:
            return t
    for t in range(max_tile, 7, -8):
        if S % t == 0:
            return t
    return S


def _probe_kernel(x_ref, o_ref):
    o_ref[...] = x_ref[...] + 1.0


@functools.lru_cache(maxsize=None)
def _weight_pipeline_mode():
    """pl.Buffered(1) for constant-index weight operands, if this jax build
    supports it (probed with a tiny kernel); otherwise None (default 2-deep)."""
    if not hasattr(pl, "Buffered"):
        return None
    try:
        y = pl.pallas_call(
            _probe_kernel,
            out_shape=jax.ShapeDtypeStruct((8, 128), jnp.float32),
            grid=(1,),
            in_specs=[pl.BlockSpec((8, 128), lambda i: (0, 0),
                                   pipeline_mode=pl.Buffered(1))],
            out_specs=pl.BlockSpec((8, 128), lambda i: (0, 0)),
        )(jnp.zeros((8, 128), jnp.float32))
        jax.block_until_ready(y)
        return pl.Buffered(1)
    except Exception:                      # pragma: no cover - older jax builds
        return None


def _const_spec(shape):
    """BlockSpec for an operand whose block is identical at every grid step.

    The index_map is constant, so the second pipeline buffer is dead VMEM:
    single-buffer it with pl.Buffered(1) when available (review item)."""
    index_map = (lambda b, s: (0, 0)) if len(shape) == 2 else (lambda b, s: (0, 0, 0))
    mode = _weight_pipeline_mode()
    if mode is None:
        return pl.BlockSpec(shape, index_map)
    return pl.BlockSpec(shape, index_map, pipeline_mode=mode)


# ----------------------------------------------------------------------------
# Kernel 1: fused QKV projection   (bf16 in, f32 accumulate, bf16 out)
#   grid = (B, S // ts); weights are a single (H, 3H) matrix (wide MXU N).
# ----------------------------------------------------------------------------
def qkv_proj_kernel(x_ref, w_ref, b_ref, o_ref):
    x = x_ref[0]                                      # (ts, H)  bf16
    y = jnp.dot(x, w_ref[...], preferred_element_type=jnp.float32) + b_ref[...]
    o_ref[0] = y.astype(o_ref.dtype)                  # lane-dense (ts, 3H)


def qkv_proj_pallas(x, wqkv, bqkv, s_tile, vmem_limit):
    B, S, H = x.shape
    H3 = wqkv.shape[1]
    return pl.pallas_call(
        qkv_proj_kernel,
        out_shape=jax.ShapeDtypeStruct((B, S, H3), jnp.bfloat16),
        grid=(B, S // s_tile),
        in_specs=[
            pl.BlockSpec((1, s_tile, H), lambda b, s: (b, s, 0)),
            _const_spec((H, H3)),                     # Wqkv, single-buffered
            _const_spec((1, H3)),                     # bqkv, single-buffered
        ],
        out_specs=pl.BlockSpec((1, s_tile, H3), lambda b, s: (b, s, 0)),
        compiler_params=pltpu.CompilerParams(
            dimension_semantics=("parallel", "parallel"),
            vmem_limit_bytes=vmem_limit),
    )(x, wqkv, bqkv)


# ----------------------------------------------------------------------------
# Kernel 2: attention (batched over heads) + out-proj + LN1 + GELU FFN + LN2
#   grid = (B, S // tq): queries tiled, full K^T/V per batch element.
#   On v7x the two grid axes are both "parallel" -> B * (S//tq) programs feed
#   both TensorCores (>= 2 at any realistic B / S).
# ----------------------------------------------------------------------------
def attn_ffn_kernel(x_ref, q_ref, kt_ref, v_ref, mask_ref,
                    wo_ref, c8_ref, w1_ref, b1_ref, w2_ref, o_ref):
    _, nh, tq, hd = q_ref.shape
    scale = 1.0 / float(hd) ** 0.5

    # Scale Q (NH,tq,hd) before the matmul: S/hd x less VALU than scaling scores.
    qh = q_ref[0] * scale                             # (NH, tq, hd) bf16
    kt = kt_ref[0]                                    # (NH, hd, S)  bf16, S on lanes
    vh = v_ref[0]                                     # (NH, S,  hd) bf16

    # QK^T with lane-dense RHS (no in-kernel K transpose), batched over heads.
    scores = jnp.einsum("hqd,hdk->hqk", qh, kt,
                        preferred_element_type=jnp.float32)
    scores = scores + mask_ref[0]                     # additive key mask, kept f32

    # softmax statistics in f32; divide via EUP reciprocal.
    m = jnp.max(scores, axis=-1, keepdims=True)
    p = jnp.exp(scores - m)
    denom = jnp.sum(p, axis=-1, keepdims=True)
    probs = (p * pl.reciprocal(denom, approx=True)).astype(jnp.bfloat16)

    ctx = jnp.einsum("hqk,hkd->hqd", probs, vh,
                     preferred_element_type=jnp.float32).astype(jnp.bfloat16)

    # Stacked constants: rows = [bo, ln1_g, ln1_b, b2, ln2_g, ln2_b, pad, pad].
    c8 = c8_ref[...]
    bo, ln1_g, ln1_b = c8[0:1], c8[1:2], c8[2:3]
    b2, ln2_g, ln2_b = c8[3:4], c8[4:5], c8[5:6]

    # Output projection with the head reduction folded into the accumulator:
    # no (NH, tq, H) f32 intermediate and no head-axis sum; only one (tq, H)
    # f32 tile (which also carries the residual + bias) stays live.
    # TODO(synk): single K=NH*hd contraction when multi-contracting dot_general
    #             (or a cheap head-fold relayout) is available in Mosaic.
    acc = x_ref[0].astype(jnp.float32) + bo           # residual + out-proj bias
    for h in range(nh):                               # static unroll over heads
        acc = acc + jnp.dot(ctx[h], wo_ref[h],
                            preferred_element_type=jnp.float32)
    h1 = _layernorm(acc, ln1_g, ln1_b)

    f1 = jnp.dot(h1.astype(jnp.bfloat16), w1_ref[...],
                 preferred_element_type=jnp.float32) + b1_ref[...]
    f1 = jax.nn.gelu(f1, approximate=True)            # TODO(synk): exact erf GELU
    f2 = jnp.dot(f1.astype(jnp.bfloat16), w2_ref[...],
                 preferred_element_type=jnp.float32)
    h2 = _layernorm(h1 + f2 + b2, ln2_g, ln2_b)

    o_ref[0] = h2.astype(o_ref.dtype)


def attn_ffn_pallas(x, q, kt, v, mask_add, lp, s_tile, vmem_limit):
    B, S, H = x.shape
    NH, hd = q.shape[1], q.shape[3]
    I = lp["w1"].shape[1]

    in_specs = [
        pl.BlockSpec((1, s_tile, H), lambda b, s: (b, s, 0)),          # x residual
        pl.BlockSpec((1, NH, s_tile, hd), lambda b, s: (b, 0, s, 0)),  # q tile
        pl.BlockSpec((1, NH, hd, S), lambda b, s: (b, 0, 0, 0)),       # K^T full
        pl.BlockSpec((1, NH, S, hd), lambda b, s: (b, 0, 0, 0)),       # V full
        pl.BlockSpec((1, 1, S), lambda b, s: (b, 0, 0)),               # key mask
        _const_spec((NH, hd, H)),                                      # Wo
        _const_spec((8, H)),                                           # bo/LN1/b2/LN2
        _const_spec((H, I)), _const_spec((1, I)),                      # W1, b1
        _const_spec((I, H)),                                           # W2
    ]
    return pl.pallas_call(
        attn_ffn_kernel,
        out_shape=jax.ShapeDtypeStruct((B, S, H), jnp.bfloat16),
        grid=(B, S // s_tile),
        in_specs=in_specs,
        out_specs=pl.BlockSpec((1, s_tile, H), lambda b, s: (b, s, 0)),
        compiler_params=pltpu.CompilerParams(
            dimension_semantics=("parallel", "parallel"),
            vmem_limit_bytes=vmem_limit),
    )(x, q, kt, v, mask_add, lp["wo"], lp["c8"], lp["w1"], lp["b1"], lp["w2"])


def encoder_layer(x_bf16, mask_add, lp, num_heads, s_tile, vmem_limit):
    B, S, H = x_bf16.shape
    hd = H // num_heads
    qkv = qkv_proj_pallas(x_bf16, lp["wqkv"], lp["bqkv"], s_tile, vmem_limit)
    q, k, v = jnp.split(qkv, 3, axis=-1)
    # Wrapper-side layout plumbing only: Q/V -> (B, NH, S, hd); K -> (B, NH,
    # hd, S) so the QK^T RHS is lane-dense in S (no in-kernel K transpose).
    # TODO(synk): emit these head-major layouts straight from the QKV kernel
    #             to drop this extra HBM activation round trip per layer.
    q = q.reshape(B, S, num_heads, hd).transpose(0, 2, 1, 3)
    v = v.reshape(B, S, num_heads, hd).transpose(0, 2, 1, 3)
    kt = k.reshape(B, S, num_heads, hd).transpose(0, 2, 3, 1)
    return attn_ffn_pallas(x_bf16, q, kt, v, mask_add, lp, s_tile, vmem_limit)


# ----------------------------------------------------------------------------
# Parameter init (synthetic, deterministic)
# ----------------------------------------------------------------------------
def init_params(key, vocab, max_pos, hidden, inter, num_layers, num_heads):
    hd = hidden // num_heads

    def nrm(k, shape, scale=0.02, dtype=jnp.bfloat16):
        return (scale * jax.random.normal(k, shape)).astype(dtype)

    keys = jax.random.split(key, 4 + num_layers)
    params = {
        "word_emb": nrm(keys[0], (vocab, hidden), dtype=jnp.float32),
        "pos_emb": nrm(keys[1], (max_pos, hidden), dtype=jnp.float32),
        "type_emb": nrm(keys[2], (2, hidden), dtype=jnp.float32),
        "emb_ln_g": jnp.ones((1, hidden), jnp.float32),
        "emb_ln_b": jnp.zeros((1, hidden), jnp.float32),
        "layers": [],
    }
    zeros_h = jnp.zeros((1, hidden), jnp.float32)
    ones_h = jnp.ones((1, hidden), jnp.float32)
    for li in range(num_layers):
        lk = jax.random.split(keys[4 + li], 4)
        bo, ln1_g, ln1_b = zeros_h, ones_h, zeros_h
        b2, ln2_g, ln2_b = zeros_h, ones_h, zeros_h
        # One stacked (8, H) f32 constants operand instead of six (1, H) ones:
        # rows = [bo, ln1_g, ln1_b, b2, ln2_g, ln2_b, pad, pad].
        c8 = jnp.concatenate([bo, ln1_g, ln1_b, b2, ln2_g, ln2_b,
                              zeros_h, zeros_h], axis=0)
        params["layers"].append({
            # fused QKV weight (H, 3H) in bf16 (wide MXU N)
            "wqkv": nrm(lk[0], (hidden, 3 * hidden)),
            "bqkv": jnp.zeros((1, 3 * hidden), jnp.float32),
            # output projection kept per-head (NH, hd, H) bf16
            "wo": nrm(lk[1], (num_heads, hd, hidden)),
            "c8": c8,
            "w1": nrm(lk[2], (hidden, inter)),
            "b1": jnp.zeros((1, inter), jnp.float32),
            "w2": nrm(lk[3], (inter, hidden)),
        })
    return params


# ----------------------------------------------------------------------------
# Full forward (mirrors CamembertWordPieceEncoder.forward)
# ----------------------------------------------------------------------------
def camembert_wordpiece_encoder_forward(word_pieces, params, num_heads):
    B, S = word_pieces.shape
    H = params["word_emb"].shape[1]
    vmem_limit, max_tile = _device_tiling()
    s_tile = _seq_tile(S, max_tile)

    # drop_word: word_dropout == 0 / eval -> identity.
    attn_mask = (word_pieces != PAD_IDX)
    mask_add = jnp.where(attn_mask, 0.0, -1e9).astype(jnp.float32).reshape(B, 1, S)

    # RoBERTa/Camembert position ids: incremental from padding_idx+1 for
    # non-pad tokens, frozen at padding_idx for <pad>.
    mask_i = attn_mask.astype(jnp.int32)
    positions = PAD_IDX + jnp.cumsum(mask_i, axis=1) * mask_i          # (B, S)

    # Embeddings + embedding LayerNorm: plain JAX (XLA fuses gather + adds +
    # LN into one memory pass; no standalone pallas_call round trip).
    emb = (jnp.take(params["word_emb"], word_pieces, axis=0)
           + jnp.take(params["pos_emb"], positions, axis=0)
           + params["type_emb"][0][None, None, :])
    emb = _layernorm(emb.astype(jnp.float32),
                     params["emb_ln_g"], params["emb_ln_b"])
    hidden = emb.astype(jnp.bfloat16)

    # Encoder layers (Pallas kernels); output_all_encoded_layers=True.
    all_layers = []
    for lp in params["layers"]:
        hidden = encoder_layer(hidden, mask_add, lp, num_heads, s_tile, vmem_limit)
        all_layers.append(hidden)

    # layers='-1' -> last hidden layer; concat on last dim; Dropout(p=0) -> id.
    selected = [all_layers[-1]]
    outputs = jnp.concatenate(selected, axis=-1)
    return outputs.astype(jnp.float32)


# ----------------------------------------------------------------------------
# Demo
# ----------------------------------------------------------------------------
if __name__ == "__main__":
    key = jax.random.PRNGKey(0)
    B, S = 2, 8             # batch, max wordpiece length
    H, NH, I = 128, 2, 256  # hidden (lane-dense), heads, intermediate
    NUM_LAYERS = 2
    VOCAB = 100
    MAX_POS = S + PAD_IDX + 2

    k_tok, k_par = jax.random.split(key)
    # Synthetic wordpiece ids: <s> tok... </s> <pad>...
    body = jax.random.randint(k_tok, (B, S), 10, VOCAB, dtype=jnp.int32)
    ids = body.at[:, 0].set(CLS_IDX)
    ids = ids.at[0, 5].set(SEP_IDX)
    ids = ids.at[0, 6:].set(PAD_IDX)
    ids = ids.at[1, 7].set(SEP_IDX)
    word_pieces = ids

    params = init_params(k_par, VOCAB, MAX_POS, H, I, NUM_LAYERS, NH)

    out = camembert_wordpiece_encoder_forward(word_pieces, params, num_heads=NH)
    out = jax.block_until_ready(out)
    assert out.shape == (B, S, H) and out.dtype == jnp.float32
    assert bool(jnp.all(jnp.isfinite(out)))
    print("KERNEL_OK")
</pallas_src>

<mosaic_0001>
module attributes {stable_mosaic.version = 11 : i64} {
  func.func @_probe_kernel(%arg0: i32, %arg1: memref<8x128xf32, #tpu.memory_space<vmem>>, %arg2: memref<8x128xf32, #tpu.memory_space<vmem>>) attributes {dimension_semantics = [#tpu.dimension_semantics<arbitrary>], iteration_bounds = array<i64: 1>, scalar_prefetch = 0 : i64, scratch_operands = 0 : i64, tpu.core_type = #tpu.core_type<tc>, window_params = [{pipeline_mode = #tpu.pipeline_mode<synchronous>, transform_indices = @transform_0, window_bounds = array<i64: 8, 128>}, {pipeline_mode = #tpu.pipeline_mode<synchronous>, transform_indices = @transform_1, window_bounds = array<i64: 8, 128>}]} {
    %c0 = arith.constant 0 : index
    %c0_0 = arith.constant 0 : index
    %0 = vector.load %arg1[%c0, %c0_0] : memref<8x128xf32, #tpu.memory_space<vmem>>, vector<8x128xf32>
    %cst = arith.constant 1.000000e+00 : f32
    %1 = vector.broadcast %cst : f32 to vector<8x128xf32>
    %2 = arith.addf %0, %1 : vector<8x128xf32>
    %c0_1 = arith.constant 0 : index
    %c0_2 = arith.constant 0 : index
    %3 = vector.load %arg2[%c0_1, %c0_2] : memref<8x128xf32, #tpu.memory_space<vmem>>, vector<8x128xf32>
    tpu.vector_store %arg2[%c0_1, %c0_2], %2 {strides = array<i32>} : memref<8x128xf32, #tpu.memory_space<vmem>>, vector<8x128xf32>,
    return
  }
  func.func @transform_0(%arg0: i32) -> (i32, i32) {
    %c0_i32 = arith.constant 0 : i32
    %c0_i32_0 = arith.constant 0 : i32
    %c0_i32_1 = arith.constant 0 : i32
    return %c0_i32, %c0_i32_0 : i32, i32
  }
  func.func @transform_1(%arg0: i32) -> (i32, i32) {
    %c0_i32 = arith.constant 0 : i32
    %c0_i32_0 = arith.constant 0 : i32
    %c0_i32_1 = arith.constant 0 : i32
    return %c0_i32, %c0_i32_0 : i32, i32
  }
}

module attributes {stable_mosaic.version = 11 : i64} {
  func.func @qkv_proj_kernel(%arg0: i32, %arg1: i32, %arg2: memref<1x8x128xbf16, #tpu.memory_space<vmem>>, %arg3: memref<128x384xbf16, #tpu.memory_space<vmem>>, %arg4: memref<1x384xf32, #tpu.memory_space<vmem>>, %arg5: memref<1x8x384xbf16, #tpu.memory_space<vmem>>) attributes {dimension_semantics = [#tpu.dimension_semantics<parallel>, #tpu.dimension_semantics<parallel>], iteration_bounds = array<i64: 2, 1>, scalar_prefetch = 0 : i64, scratch_operands = 0 : i64, tpu.core_type = #tpu.core_type<tc>, window_params = [{transform_indices = @transform_0, window_bounds = array<i64: 1, 8, 128>}, {pipeline_mode = #tpu.pipeline_mode<synchronous>, transform_indices = @transform_1, window_bounds = array<i64: 128, 384>}, {pipeline_mode = #tpu.pipeline_mode<synchronous>, transform_indices = @transform_2, window_bounds = array<i64: 1, 384>}, {transform_indices = @transform_3, window_bounds = array<i64: 1, 8, 384>}]} {
    %c0 = arith.constant 0 : index
    %c0_0 = arith.constant 0 : index
    %c0_1 = arith.constant 0 : index
    %0 = vector.load %arg2[%c0, %c0_0, %c0_1] : memref<1x8x128xbf16, #tpu.memory_space<vmem>>, vector<1x8x128xbf16>
    %1 = vector.shape_cast %0 : vector<1x8x128xbf16> to vector<8x128xbf16>
    %c0_2 = arith.constant 0 : index
    %c0_3 = arith.constant 0 : index
    %2 = vector.load %arg3[%c0_2, %c0_3] : memref<128x384xbf16, #tpu.memory_space<vmem>>, vector<128x384xbf16>
    %cst = arith.constant dense<0.000000e+00> : vector<8x384xf32>
    %3 = tpu.matmul %1, %2, %cst {dimension_numbers = #tpu.dot_dimension_numbers<[1], [0], [0], [1], [0, 0, 1, 1], [], []>} : vector<8x128xbf16>, vector<128x384xbf16>, vector<8x384xf32> -> vector<8x384xf32>
    %c0_4 = arith.constant 0 : index
    %c0_5 = arith.constant 0 : index
    %4 = vector.load %arg4[%c0_4, %c0_5] : memref<1x384xf32, #tpu.memory_space<vmem>>, vector<1x384xf32>
    %5 = vector.broadcast %4 : vector<1x384xf32> to vector<8x384xf32>
    %6 = arith.addf %3, %5 : vector<8x384xf32>
    %7 = arith.truncf %6 : vector<8x384xf32> to vector<8x384xbf16>
    %c0_6 = arith.constant 0 : index
    %c0_7 = arith.constant 0 : index
    %c0_8 = arith.constant 0 : index
    %8 = vector.load %arg5[%c0_6, %c0_7, %c0_8] : memref<1x8x384xbf16, #tpu.memory_space<vmem>>, vector<1x8x384xbf16>
    %9 = vector.shape_cast %8 : vector<1x8x384xbf16> to vector<8x384xbf16>
    %10 = vector.shape_cast %7 : vector<8x384xbf16> to vector<1x8x384xbf16>
    tpu.vector_store %arg5[%c0_6, %c0_7, %c0_8], %10 {strides = array<i32>} : memref<1x8x384xbf16, #tpu.memory_space<vmem>>, vector<1x8x384xbf16>,
    return
  }
  func.func @transform_0(%arg0: i32, %arg1: i32) -> (i32, i32, i32) {
    %c0_i32 = arith.constant 0 : i32
    %c0_i32_0 = arith.constant 0 : i32
    return %arg0, %arg1, %c0_i32 : i32, i32, i32
  }
  func.func @transform_1(%arg0: i32, %arg1: i32) -> (i32, i32) {
    %c0_i32 = arith.constant 0 : i32
    %c0_i32_0 = arith.constant 0 : i32
    %c0_i32_1 = arith.constant 0 : i32
    return %c0_i32, %c0_i32_0 : i32, i32
  }
  func.func @transform_2(%arg0: i32, %arg1: i32) -> (i32, i32) {
    %c0_i32 = arith.constant 0 : i32
    %c0_i32_0 = arith.constant 0 : i32
    %c0_i32_1 = arith.constant 0 : i32
    return %c0_i32, %c0_i32_0 : i32, i32
  }
  func.func @transform_3(%arg0: i32, %arg1: i32) -> (i32, i32, i32) {
    %c0_i32 = arith.constant 0 : i32
    %c0_i32_0 = arith.constant 0 : i32
    return %arg0, %arg1, %c0_i32 : i32, i32, i32
  }
}

</mosaic_0001>

<bundles_post_ra>
// kernel: tpu_custom_call.1
= control target key start
LH: loop header
LB: loop body
LE: loop exit
PB: predicated region body
PF: predicated region fallthrough
CT: control target
= control target key end

     0   :  { %6 = vsyncpa [#allocation3], 0  ;;  %s125_s0 = inlined_call_operand.hbm [shape: f32[8,128], index: 0, kind: input, shape index: {}]   ;;  %s126_s1 = inlined_call_operand.hbm [shape: f32[8,128], index: 1, kind: output, shape index: {}]  }
   0x1   :  { %7 = vsyncpa [#allocation4], 0  ;;  %s89_s6 = smov [#allocation2]   ;;  %s41_s10 = scalar_lea.hbm %s125_s0, 128 }
   0x2   :  { %s14_s7 = sshll.u32 %s89_s6, 4  ;;  %p42_p0 = scmp.ne.s32.totalorder %s125_s0, %s41_s10  ;;  %s15_s7 = int_to_ptr.vmem [resolvable:$true] %s14_s7 }
   0x3   :  { %p45_p1 = scmp.lt.u32.totalorder %s41_s10, %s125_s0 }
   0x5   :  { %p47_p2 = pnand %p45_p1, %p42_p0 }
   0x7   :  { %50 = shalt.err (!%p47_p2)
}
   0x8   :  { %s51_s15 = scalar_lea.vmem %s15_s7, 128  ;;  %p56_p4 = scmp.lt.s32.totalorder %s15_s7, %s15_s7 }
   0x9   :  { %p52_p3 = scmp.ne.s32.totalorder %s15_s7, %s51_s15  ;;  %p57_p5 = scmp.lt.s32.totalorder %s51_s15, %s51_s15 }
   0xb   :  { %p58_p6 = por %p57_p5, %p56_p4 }
   0xd   :  { %p59_p7 = pnand %p58_p6, %p52_p3 }
   0xf   :  { %62 = shalt.err (!%p59_p7)
}
  0x10   :  { %17 = dma.hbm_to_vmem [thread:$0]  %s125_s0, 128, %s15_s7, [#allocation3]  }
  0x11   :  { %85 = dma.done.wait [#allocation3], 128  }
  0x12   :  { %86 = vsyncadd [#allocation3], 4294967168  ;;  %s90_s18 = smov [#allocation5]   ;;  %v21_v0 = vld [vmem:[#allocation2] sm:$0xff] }
  0x13   :  { %s30_s19 = sshll.u32 %s90_s18, 4  ;;  %v22_v1 = vadd.f32 1.0, %v21_v0  ;;  %s31_s19 = int_to_ptr.vmem [resolvable:$true] %s30_s19 }
  0x14   :  { %s63_s20 = scalar_lea.vmem %s31_s19, 128  ;;  %p68_p9 = scmp.lt.s32.totalorder %s31_s19, %s31_s19 }
  0x15   :  { %23 = vst [vmem:[#allocation5] sm:$0xff] %v22_v1  ;;  %p64_p8 = scmp.ne.s32.totalorder %s31_s19, %s63_s20  ;;  %p69_p10 = scmp.lt.s32.totalorder %s63_s20, %s63_s20 }
  0x17   :  { %p70_p11 = por %p69_p10, %p68_p9 }
  0x19   :  { %p71_p12 = pnand %p70_p11, %p64_p8 }
  0x1b   :  { %74 = shalt.err (!%p71_p12)
}
  0x1c   :  { %s75_s23 = scalar_lea.hbm %s126_s1, 128 }
  0x1d   :  { %p76_p13 = scmp.ne.s32.totalorder %s126_s1, %s75_s23  ;;  %p79_p0 = scmp.lt.u32.totalorder %s75_s23, %s126_s1 }
  0x1f   :  { %p81_p1 = pnand %p79_p0, %p76_p13 }
  0x21   :  { %84 = shalt.err (!%p81_p1)
}
  0x22   :  { %33 = dma.vmem_to_hbm [thread:$0]  %s31_s19, 128, %s126_s1, [#allocation4]  }
  0x23   :  { %87 = dma.done.wait [#allocation4], 128  }
  0x24   :  { %88 = vsyncadd [#allocation4], 4294967168 }
  0x25   :  { %37 = vsyncpa [#allocation3], 1 }
  0x26   :  { %38 = vsyncpa [#allocation4], 1 }

// kernel: tpu_custom_call.1
= control target key start
LH: loop header
LB: loop body
LE: loop exit
PB: predicated region body
PF: predicated region fallthrough
CT: control target
= control target key end

     0   :  { %8 = vsyncpa [#allocation3], 0  ;;  %s1179_s0 = inlined_call_operand.hbm [shape: bf16[2,8,128], index: 0, kind: input, shape index: {}]   ;;  %s1180_s1 = inlined_call_operand.hbm [shape: bf16[128,384], index: 1, kind: input, shape index: {}]   ;;  %s1181_s2 = inlined_call_operand.vmem [shape: f32[1,384], index: 2, kind: input, shape index: {}]   ;;  %s1182_s3 = inlined_call_operand.hbm [shape: bf16[2,8,384], index: 3, kind: output, shape index: {}]  }
   0x1   :  { %10 = vsyncpa [#allocation3 + $0x1], 0 }
   0x2   :  { %11 = vsyncpa [#allocation6], 0 }
   0x3   :  { %12 = vsyncpa [#allocation4], 0 }
   0x4   :  { %14 = vsyncpa [#allocation4 + $0x1], 0  ;;  %s958_s12 = smov 0   ;;  %s960_s13 = smov 0  }
   0x5   :  { %s962_s14 = smov 0   ;;  %s964_s15 = smov 0  }
   0x6   :  { %s966_s16 = smov 0   ;;  %s968_s17 = smov 0  }
   0x7 LB: > { %s602_s18 = sadd.s32 4294967295, %s928_s17   ;;  %s603_s19 = sadd.s32 4294967294, %s928_s17   ;;  %s928_s17 = sphi %s968_s17, %s20_s17   ;;  %s924_s16 = sphi %s966_s16, %s1206_s16   ;;  %s920_s15 = sphi %s964_s15, %s1205_s15   ;;  %s916_s14 = sphi %s962_s14, %s1204_s14   ;;  %s912_s13 = sphi %s960_s13, %s1203_s13   ;;  %s908_s12 = sphi %s958_s12, %s1202_s12  }
   0x8   : > { %p54_p0 = scmp.ne.s32.totalorder %s912_s13, %s908_s12  ;;  %p992_p1 = scmp.eq.s32.totalorder %s602_s18, 0 }
   0x9   : > { %p996_p2 = scmp.eq.s32.totalorder %s602_s18, 1  ;;  %p128_p3 = scmp.eq.s32.totalorder %s603_s19, 1 }
   0xa   : > { %s1187_s20 = scalar_select %p992_p1, 1, 0 }
   0xb   : > { %s1188_s21 = scalar_select %p996_p2, 1, 0 }
   0xc   : > { %p1002_p4 = por %p992_p1, %p54_p0  ;;  %p604_p5 = scmp.ge.s32.totalorder %s928_s17, 1 }
   0xd   : > { %p1007_p6 = por %p128_p3, %p54_p0  ;;  %p135_p7 = scmp.lt.s32.totalorder %s928_s17, 3 }
   0xe   : > { %s1189_s22 = scalar_select %p1002_p4, 1, 0 }
   0xf   : > { %s1190_s23 = scalar_select %p1007_p6, 1, 0 }
  0x10   : > { %p1012_p8 = pnand %p604_p5, %p135_p7  ;;  %s930_s25 = smov [#allocation5]  }
  0x11   : > { %s147_s26 = sshll.u32 %s930_s25, 4  ;;  %s32_s28 = sadd.s32 1, %s924_s16  ;;  %s148_s26 = int_to_ptr.vmem [resolvable:$true] %s147_s26 }
  0x12   : > { %s1191_s24 = scalar_select %p1012_p8, 1, 0 }
  0x13   : > { %p682_p9 = pneg %p1012_p8  ;;  %s784_s4 = scalar_lea.hbm %s1180_s1, 3072 }
  0x14   : > { %p785_p12 = scmp.ne.s32.totalorder %s1180_s1, %s784_s4  ;;  %p791_p5 = scmp.lt.u32.totalorder %s784_s4, %s1180_s1 }
  0x15   : > { %p1021_p11 = pnand %p682_p9, %p992_p1 }
  0x17   : > { %p786_p13 = pneg %p1021_p11 }
  0x19   : > { %p787_p0 = pnand %p786_p13, %p785_p12 }
  0x1b   : > { %p788_p3 = pneg %p787_p0 }
  0x1d   : > { %p793_p7 = pnand %p791_p5, %p788_p3 }
  0x1f   : > { %796 = shalt.err (!%p793_p7)
}
  0x20   : > { %s797_s9 = scalar_lea.vmem %s148_s26, 3072  ;;  %p805_p1 = scmp.lt.s32.totalorder %s148_s26, %s148_s26 }
  0x21   : > { %p798_p9 = scmp.ne.s32.totalorder %s148_s26, %s797_s9  ;;  %p806_p4 = scmp.lt.s32.totalorder %s797_s9, %s797_s9 }
  0x23   : > { %p800_p10 = pnand %p798_p9, %p786_p13  ;;  %p807_p8 = por %p806_p4, %p805_p1 }
  0x25   : > { %p801_p6 = pneg %p800_p10 }
  0x27   : > { %p808_p2 = pnand %p807_p8, %p801_p6 }
  0x29   : > { %811 = shalt.err (!%p808_p2)
}
  0x2a   : > { %s931_s10 = smov 192   ;;  %s932_s11 = smov 12  }
  0x2b   : > { %685 = dma.hbm_to_vmem [thread:$0]  (!%p1021_p11), %s1180_s1, 3072, %s148_s26, [#allocation6], %s931_s10, %s931_s10, %s932_s11  }
  0x2c   : > { %p34_p1 = scmp.ge.s32.totalorder %s32_s28, 2  ;;  %s41_s25 = sadd.s32 1, %s916_s14 }
  0x2d   : > { %p48_p2 = scmp.ne.s32.totalorder %s916_s14, %s912_s13  ;;  %p49_p4 = scmp.eq.s32.totalorder %s928_s17, 0 }
  0x2e   : > { %s1208_s28 = smov (%p34_p1, %s32_s28), 0  ;;  %p1194_p8 = scmp.ne.s32.totalorder %s1188_s21, 0 }
  0x2f   : > { %p1048_p6 = por %p49_p4, %p48_p2  ;;  %s36_s27 = ssub.s32 %s924_s16, %s1208_s28 }
  0x30   : > { %p1054_p10 = por %p1194_p8, %p48_p2  ;;  %p695_p12 = scmp.lt.s32.totalorder %s928_s17, 2 }
  0x31   : > { %p39_p11 = scmp.eq.s32.totalorder %s36_s27, 0  ;;  %s164_s26 = sand.u32 1, %s916_s14  }
  0x32   : > { %s607_s4 = sshll.u32 %s164_s26, 2  ;;  %s608_s6 = sshll.u32 %s924_s16, 6 }
  0x33   : > { %s1063_s5 = scalar_select %p39_p11, %s916_s14, %s41_s25  }
  0x34   : > { %s1069_s9 = scalar_lea.hbm %s1179_s0, %s608_s6  ;;  %s168_s21 = scalar_lea.vmem [#allocation2], %s607_s4 }
  0x35   : > { %s176_s10 = sshll.u32 %s168_s21, 4  ;;  %p1075_p13 = pnand %p695_p12, %p1048_p6  ;;  %s1071_s10 = int_to_ptr.vmem [resolvable:$true] %s176_s10 }
  0x36   : > { %s165_s18 = scalar_lea.sflag [#allocation3], %s164_s26  ;;  %s812_s19 = scalar_lea.hbm %s1069_s9, 64 }
  0x37   : > { %p813_p0 = scmp.ne.s32.totalorder %s1069_s9, %s812_s19  ;;  %p814_p3 = pneg %p1075_p13 }
  0x38   : > { %s817_s4 = scalar_lea.hbm %s1179_s0, 128  ;;  %p818_p9 = scmp.lt.u32.totalorder %s1069_s9, %s1179_s0 }
  0x39   : > { %p815_p5 = pnand %p814_p3, %p813_p0  ;;  %p819_p1 = scmp.lt.u32.totalorder %s817_s4, %s812_s19 }
  0x3a   : > { %p821_p4 = scmp.lt.u32.totalorder %s812_s19, %s1069_s9 }
  0x3b   : > { %p816_p7 = pneg %p815_p5  ;;  %p820_p2 = por %p819_p1, %p818_p9 }
  0x3d   : > { %p822_p6 = por %p821_p4, %p820_p2 }
  0x3f   : > { %p823_p8 = pnand %p822_p6, %p816_p7 }
  0x41   : > { %826 = shalt.err (!%p823_p8)
}
  0x42   : > { %s827_s26 = scalar_lea.vmem %s1071_s10, 64  ;;  %s933_s7 = smov [#allocation2]  }
  0x43   : > { %p828_p12 = scmp.ne.s32.totalorder %s1071_s10, %s827_s26  ;;  %s832_s8 = sshll.u32 %s933_s7, 4  ;;  %s833_s8 = int_to_ptr.vmem [resolvable:$false] %s832_s8 }
  0x44   : > { %s834_s21 = scalar_lea.vmem %s833_s8, 128  ;;  %p835_p5 = scmp.lt.s32.totalorder %s1071_s10, %s833_s8 }
  0x45   : > { %p830_p11 = pnand %p828_p12, %p814_p3  ;;  %p836_p9 = scmp.lt.s32.totalorder %s834_s21, %s827_s26 }
  0x47   : > { %p831_p0 = pneg %p830_p11  ;;  %p837_p1 = por %p836_p9, %p835_p5 }
  0x49   : > { %p838_p2 = pnand %p837_p1, %p831_p0 }
  0x4b   : > { %841 = shalt.err (!%p838_p2)
}
  0x4c   : > { %689 = dma.hbm_to_vmem [thread:$0]  (!%p1075_p13), %s1069_s9, 64, %s1071_s10, %s165_s18  }
  0x4d   : > { %p1197_p7 = scmp.ne.s32.totalorder %s1191_s24, 0 }
  0x4e   : > { %s1107_s19 = sand.u32 (!%p1197_p7), 1, %s912_s13   ;;  %p1198_p3 = scmp.ne.s32.totalorder (!%p1197_p7), %s1189_s22, 0 }
  0x4f   : > { %185 = sbr.rel (%p1197_p7) target bundleno = 355 (0x163), region = 32  ;;  %s610_s25 = sshll.u32 (!%p1197_p7), %s1107_s19, 2 }
  0x50   : > { %s188_s27 = scalar_lea.sflag (!%p1197_p7), [#allocation3], %s1107_s19  ;;  %s1111_s4 = scalar_lea.vmem (!%p1197_p7), [#allocation2], %s610_s25 }
  0x56   : > { %895 = dma.done.wait (%p1198_p3), %s188_s27, 64  }
  0x57   : > { %897 = vsyncadd (%p1198_p3), %s188_s27, 4294967232  ;;  %p1199_p13 = scmp.ne.s32.totalorder %s1187_s20, 0 }
  0x59   : > { %899 = dma.done.wait (%p1199_p13), [#allocation6], 3072  }
  0x5a   : > { %901 = vsyncadd (%p1199_p13), [#allocation6], 4294964224  ;;  %v934_v0 = vmov 0.0   ;;  %vm935_vm0 = vmmov 0   ;;  %v936_v1 = vmov 0   ;;  %v254_v27 = vlaneseq  ;;  %s672_s24 = smul.u32 12, %s1107_s19 }
  0x5b   : > { %652 = vmatprep.subr.bf16.mxu1 %v934_v0  ;;  %668 = vmatprep.mubr.msk.bf16.mxu1 %vm935_vm0, %v934_v0  ;;  %v752_v2 = vld [vmem:[#allocation5 + $0x4] ss:$12 sps:$4 sm:$0xff]   ;;  %v754_v3 = vld [vmem:[#allocation5 + $0x8] ss:$12 sps:$4 sm:$0xff]   ;;  %v755_v4 = vld [vmem:[#allocation5] ss:$12 sps:$4 sm:$0xff]  }
  0x5c   : > { %429 = vmatprep.mubr.bf16.mxu0 %v936_v1  ;;  %397 = vmatprep.subr.bf16.mxu0 %v752_v2  ;;  %v756_v5 = vld [vmem:[#allocation5 + $0x1c] ss:$12 sps:$4 sm:$0xff]   ;;  %v758_v6 = vld [vmem:[#allocation5 + $0x20] ss:$12 sps:$4 sm:$0xff]   ;;  %v759_v7 = vld [vmem:[#allocation5 + $0x18] ss:$12 sps:$4 sm:$0xff]  }
  0x5d   : > { %653 = vmatpush3.bf16.msra.mxu1 %v754_v3  ;;  %398 = vmatpush1.bf16.msra.mxu0 %v755_v4  ;;  %v760_v8 = vld [vmem:[#allocation5 + $0x34] ss:$12 sps:$4 sm:$0xff]   ;;  %v762_v9 = vld [vmem:[#allocation5 + $0x38] ss:$12 sps:$4 sm:$0xff]   ;;  %v763_v10 = vld [vmem:[#allocation5 + $0x30] ss:$12 sps:$4 sm:$0xff]  }
  0x5e   : > { %654 = vmatprep.subr.bf16.mxu1 %v934_v0  ;;  %399 = vmatprep.subr.bf16.mxu0 %v756_v5  ;;  %v764_v11 = vld [vmem:[#allocation5 + $0x4c] ss:$12 sps:$4 sm:$0xff]   ;;  %v766_v12 = vld [vmem:[#allocation5 + $0x50] ss:$12 sps:$4 sm:$0xff]   ;;  %v767_v13 = vld [vmem:[#allocation5 + $0x48] ss:$12 sps:$4 sm:$0xff]  }
  0x5f   : > { %v768_v14 = vld [vmem:[#allocation5 + $0x64] ss:$12 sps:$4 sm:$0xff]   ;;  %v770_v15 = vld [vmem:[#allocation5 + $0x68] ss:$12 sps:$4 sm:$0xff]   ;;  %v771_v16 = vld [vmem:[#allocation5 + $0x60] ss:$12 sps:$4 sm:$0xff]  }
  0x60   : > { %v772_v17 = vld [vmem:[#allocation5 + $0x7c] ss:$12 sps:$4 sm:$0xff]   ;;  %v774_v18 = vld [vmem:[#allocation5 + $0x80] ss:$12 sps:$4 sm:$0xff]   ;;  %v775_v19 = vld [vmem:[#allocation5 + $0x78] ss:$12 sps:$4 sm:$0xff]  }
  0x61   : > { %655 = vmatpush3.bf16.msra.mxu1 %v758_v6  ;;  %400 = vmatpush1.bf16.msra.mxu0 %v759_v7  ;;  %v776_v20 = vld [vmem:[#allocation5 + $0x94] ss:$12 sps:$4 sm:$0xff]   ;;  %v778_v21 = vld [vmem:[#allocation5 + $0x98] ss:$12 sps:$4 sm:$0xff]   ;;  %v779_v22 = vld [vmem:[#allocation5 + $0x90] ss:$12 sps:$4 sm:$0xff]  }
  0x62   : > { %656 = vmatprep.subr.bf16.mxu1 %v934_v0  ;;  %401 = vmatprep.subr.bf16.mxu0 %v760_v8  ;;  %v780_v23 = vld [vmem:[#allocation5 + $0xac] ss:$12 sps:$4 sm:$0xff]   ;;  %v782_v24 = vld [vmem:[#allocation5 + $0xb0] ss:$12 sps:$4 sm:$0xff]   ;;  %v783_v25 = vld [vmem:[#allocation5 + $0xa8] ss:$12 sps:$4 sm:$0xff]  }
  0x63   : > { %v219_v26 = vld [vmem:[%s1111_s4] sm:$0xf]  ;;  %v255_v28 = vshrl.u32 %v254_v27, 7  ;;  %s673_s9 = smul.u32 192, %s920_s15  ;;  %s217_s10 = scalar_lea.vmem [#allocation7], %s672_s24 }
  0x64   : > { %v252_v30 = vld [vmem:[%s1181_s2] sm:$0x7]  ;;  %s510_s11 = sshll.u32 %s217_s10, 4  ;;  %s494_s15 = scalar_lea.sflag [#allocation4], %s1107_s19  ;;  %s1132_s11 = int_to_ptr.vmem [resolvable:$true] %s510_s11 }
  0x65   : > { %657 = vmatpush3.bf16.msra.mxu1 %v762_v9  ;;  %402 = vmatpush1.bf16.msra.mxu0 %v763_v10  ;;  %v264_v29 = vsub.s32 2, %v255_v28  ;;  %v256_v31 = vsub.s32 0, %v255_v28  ;;  %v260_v32 = vsub.s32 1, %v255_v28  ;;  %s1130_s6 = scalar_lea.hbm %s1182_s3, %s673_s9  ;;  %s842_s26 = scalar_lea.vmem %s1132_s11, 192 }
  0x66   : > { %658 = vmatprep.subr.bf16.mxu1 %v934_v0  ;;  %403 = vmatprep.subr.bf16.mxu0 %v764_v11  ;;  %p843_p4 = scmp.ne.s32.totalorder %s1132_s11, %s842_s26  ;;  %s937_s7 = smov [#allocation7]  }
  0x67   : > { %v265_v33 = vrot.slane %v252_v30, %v264_v29  ;;  %v257_v34 = vrot.slane %v252_v30, %v256_v31  ;;  %v261_v35 = vrot.slane %v252_v30, %v260_v32  ;;  %s846_s8 = sshll.u32 %s937_s7, 4  ;;  %s847_s8 = int_to_ptr.vmem [resolvable:$false] %s846_s8 }
  0x68   : > { %p844_p6 = pnand %p843_p4, %p1054_p10  ;;  %s848_s21 = scalar_lea.vmem %s847_s8, 384 }
  0x69   : > { %659 = vmatpush3.bf16.msra.mxu1 %v766_v12  ;;  %404 = vmatpush1.bf16.msra.mxu0 %v767_v13  ;;  %p849_p12 = scmp.lt.s32.totalorder %s1132_s11, %s847_s8  ;;  %p850_p11 = scmp.lt.s32.totalorder %s848_s21, %s842_s26 }
  0x6a   : > { %660 = vmatprep.subr.bf16.mxu1 %v934_v0  ;;  %405 = vmatprep.subr.bf16.mxu0 %v768_v14  ;;  %p845_p8 = pneg %p844_p6 }
  0x6b   : > { %p851_p0 = por %p850_p11, %p849_p12 }
  0x6d   : > { %661 = vmatpush3.bf16.msra.mxu1 %v770_v15  ;;  %406 = vmatpush1.bf16.msra.mxu0 %v771_v16  ;;  %p852_p5 = pnand %p851_p0, %p845_p8 }
  0x6e   : > { %662 = vmatprep.subr.bf16.mxu1 %v934_v0  ;;  %407 = vmatprep.subr.bf16.mxu0 %v772_v17 }
  0x71   : > { %663 = vmatpush3.bf16.msra.mxu1 %v774_v18  ;;  %408 = vmatpush1.bf16.msra.mxu0 %v775_v19 }
  0x72   : > { %664 = vmatprep.subr.bf16.mxu1 %v934_v0  ;;  %409 = vmatprep.subr.bf16.mxu0 %v776_v20 }
  0x75   : > { %665 = vmatpush3.bf16.msra.mxu1 %v778_v21  ;;  %410 = vmatpush1.bf16.msra.mxu0 %v779_v22 }
  0x76   : > { %666 = vmatprep.subr.bf16.mxu1 %v934_v0  ;;  %411 = vmatprep.subr.bf16.mxu0 %v780_v23 }
  0x79   : > { %667 = vmatpush3.bf16.msra.mxu1 %v782_v24  ;;  %412 = vmatpush1.bf16.msra.mxu0 %v783_v25 }
  0x7c   : > { %669 = vmatmul.mubr.bf16.vlgmr.msra.gmra.mrb[0].mxu1 %v219_v26  ;;  %430 = vmatmul.mubr.bf16.vlgmr.msra.gmra.mrb[0].mxu0 %v219_v26 }
 0x14f   : > { %v472_v36 = vpop.f32.mrb[0].mxu1  ;;  %v431_v38 = vpop.f32.mrb[0].mxu0 }
 0x150   : > { %v473_v37 = vadd.f32 %v472_v36, %v265_v33  ;;  %v670_v39 = vpop.f32.mrb[1].mxu1  ;;  %v432_v40 = vadd.f32 %v431_v38, %v257_v34  ;;  %v433_v41 = vpop.f32.mrb[1].mxu0 }
 0x151   : > { %v475_v42 = vpop.f32.mrb[2].mxu1  ;;  %v434_v44 = vadd.f32 %v433_v41, %v261_v35  ;;  %v435_v45 = vpop.f32.mrb[2].mxu0 }
 0x152   : > { %v642_v43 = vpack.c.bf16 %v473_v37, %v473_v37  ;;  %v671_v46 = vpop.f32.mrb[3].mxu1  ;;  %v436_v47 = vpop.f32.mrb[3].mxu0 }
 0x153   : > { %v641_v48 = vpack.c.bf16 %v434_v44, %v432_v40 }
 0x154   : > { %492 = vst [vmem:[%s217_s10 + $0x8] sm:$0xf] %v642_v43 }
 0x155   : > { %491 = vst [vmem:[%s217_s10] sm:$0xff] %v641_v48 }
 0x156   : > { %855 = shalt.err (!%p852_p5)
}
 0x157   : > { %s856_s19 = scalar_lea.hbm %s1130_s6, 192  ;;  %s860_s4 = scalar_lea.hbm %s1182_s3, 384 }
 0x158   : > { %p857_p9 = scmp.ne.s32.totalorder %s1130_s6, %s856_s19  ;;  %p861_p7 = scmp.lt.u32.totalorder %s1130_s6, %s1182_s3 }
 0x159   : > { %p862_p3 = scmp.lt.u32.totalorder %s860_s4, %s856_s19  ;;  %p864_p4 = scmp.lt.u32.totalorder %s856_s19, %s1130_s6 }
 0x15a   : > { %p858_p1 = pnand %p857_p9, %p1054_p10 }
 0x15b   : > { %p863_p13 = por %p862_p3, %p861_p7 }
 0x15c   : > { %p859_p2 = pneg %p858_p1 }
 0x15d   : > { %p865_p6 = por %p864_p4, %p863_p13 }
 0x15f   : > { %p866_p8 = pnand %p865_p6, %p859_p2 }
 0x161   : > { %869 = shalt.err (!%p866_p8)
}
 0x162   : > { %680 = dma.vmem_to_hbm [thread:$0]  (%p1054_p10), %s1132_s11, 192, %s1130_s6, %s494_s15  }
 0x163 PF: > { %s522_s24 = sand.u32 1, %s908_s12   ;;  %p1200_p12 = scmp.ne.s32.totalorder %s1190_s23, 0 }
 0x164   : > { %p1201_p11 = scmp.ge.s32.totalorder %s928_s17, 2  ;;  %s523_s9 = scalar_lea.sflag [#allocation4], %s522_s24 }
 0x166   : > { %p691_p0 = pnand %p1201_p11, %p1200_p12 }
 0x168   : > { %903 = dma.done.wait (!%p691_p0), %s523_s9, 192  }
 0x169   : > { %905 = vsyncadd (!%p691_p0), %s523_s9, 4294967104  ;;  %s20_s17 = sadd.s32 1, %s928_s17   ;;  %s1202_s12 = smov %s912_s13 }
 0x16a   : > { %p17_p5 = scmp.ge.s32.totalorder %s20_s17, 4   ;;  %s1203_s13 = smov %s916_s14 }
 0x16b   : > { %s1204_s14 = smov %s1063_s5  ;;  %s1205_s15 = smov %s924_s16 }
 0x16c   : > { %s1206_s16 = smov %s1208_s28  ;;  %19 = sbr.rel (!%p17_p5) target bundleno = 7 (0x7), region = 81 }
 0x173   :  { %528 = vsyncpa [#allocation3], 1 }
 0x174   :  { %530 = vsyncpa [#allocation3 + $0x1], 1 }
 0x175   :  { %531 = vsyncpa [#allocation6], 1 }
 0x176   :  { %532 = vsyncpa [#allocation4], 1 }
 0x177   :  { %534 = vsyncpa [#allocation4 + $0x1], 1 }

</bundles_post_ra>
